<compile_context>
chip_gen: v7x
topology: tpu7x:2x2x1
jax: 0.10.0
libtpu: 0.0.40
codegen_flags: <defaults>
</compile_context>

<pallas_src>
import jax
import jax.numpy as jnp
import numpy as np
from jax import lax
from jax.experimental import pallas as pl
from jax.experimental.pallas import tpu as pltpu


# ----------------------------- fused Pallas kernel -------------------------- #

def _down_fused_kernel(xw_ref, w1_ref, b1_ref, w2_ref, b2_ref, o_ref,
                       xpad1_ref, xpad2_ref):
    # xw_ref : (1, 4, Hp, Wp, Cin) bf16 -- 4 = taps of the 2x2 max-pool window
    # w*_ref : (9*Cin, Cmid) / (9*Cmid, Cout) bf16, BN scale pre-folded
    # b*_ref : (1, Cmid) / (1, Cout) f32 (conv bias + BN shift folded)
    # o_ref  : (1, Hp*Wp, Cout) bf16
    # xpad*  : (Hp+2, Wp+2, C) f32 scratch (zero "SAME" halo kept in VMEM)
    _, _, Hp, Wp, Cin = xw_ref.shape
    Cmid = w1_ref.shape[1]

    def pad_store(xpad_ref, interior, c):
        # Zero only the 1-pixel border; the interior is fully overwritten.
        zrow = jnp.zeros((1, Wp + 2, c), jnp.float32)
        zcol = jnp.zeros((Hp, 1, c), jnp.float32)
        xpad_ref[pl.ds(0, 1)] = zrow                            # top row
        xpad_ref[pl.ds(Hp + 1, 1)] = zrow                       # bottom row
        xpad_ref[pl.ds(1, Hp), pl.ds(0, 1), :] = zcol           # left col
        xpad_ref[pl.ds(1, Hp), pl.ds(Wp + 1, 1), :] = zcol      # right col
        xpad_ref[pl.ds(1, Hp), pl.ds(1, Wp), :] = interior      # payload

    def conv3x3_bias_relu(xpad_ref, w_ref, b_ref, cin, cout):
        # 9 accumulated tap matmuls -- no im2col scratch, no 9x tap re-store.
        # Each tap is a pure load + bf16 cast that the scheduler overlaps with
        # the MXU pushes; accumulation stays in f32.
        acc = jnp.zeros((Hp * Wp, cout), jnp.float32)
        for k in range(9):
            dh, dw = k // 3, k % 3
            tap = xpad_ref[pl.ds(dh, Hp), pl.ds(dw, Wp), :]
            tap = tap.reshape(Hp * Wp, cin).astype(jnp.bfloat16)
            acc = acc + jnp.dot(tap, w_ref[pl.ds(k * cin, cin), :],
                                preferred_element_type=jnp.float32)
        return jnp.maximum(acc + b_ref[...], 0.0)   # f32 epilogue (v5e-safe)

    # ---- MaxPool2d(2): elementwise max over the 4 pre-split window taps ----
    # (bf16 rounding is monotone, so pooling the bf16 input is exact w.r.t.
    #  the bf16 operands the matmul uses anyway.)
    pooled = jnp.maximum(jnp.maximum(xw_ref[0, 0], xw_ref[0, 1]),
                         jnp.maximum(xw_ref[0, 2], xw_ref[0, 3]))

    # ---- conv1: pad in VMEM, 9 tap matmuls, +bias, ReLU, store once ----
    pad_store(xpad1_ref, pooled.astype(jnp.float32), Cin)
    y1 = conv3x3_bias_relu(xpad1_ref, w1_ref, b1_ref, Cin, Cmid)   # (Hp*Wp, Cmid)

    # ---- conv2: conv1 output goes straight into its padded input buffer ----
    pad_store(xpad2_ref, y1.reshape(Hp, Wp, Cmid), Cmid)
    y2 = conv3x3_bias_relu(xpad2_ref, w2_ref, b2_ref, Cmid, w2_ref.shape[1])

    o_ref[0] = y2.astype(jnp.bfloat16)              # single bf16 output store


# ------------------------------ host wrappers ------------------------------ #

def down_fused(xw, w1, b1, w2, b2):
    N, _, Hp, Wp, Cin = xw.shape
    Cmid = w1.shape[1]
    Cout = w2.shape[1]
    return pl.pallas_call(
        _down_fused_kernel,
        out_shape=jax.ShapeDtypeStruct((N, Hp * Wp, Cout), jnp.bfloat16),
        grid=(N,),
        in_specs=[
            pl.BlockSpec((1, 4, Hp, Wp, Cin), lambda n: (n, 0, 0, 0, 0)),
            pl.BlockSpec((9 * Cin, Cmid), lambda n: (0, 0)),
            pl.BlockSpec((1, Cmid), lambda n: (0, 0)),
            pl.BlockSpec((9 * Cmid, Cout), lambda n: (0, 0)),
            pl.BlockSpec((1, Cout), lambda n: (0, 0)),
        ],
        out_specs=pl.BlockSpec((1, Hp * Wp, Cout), lambda n: (n, 0, 0)),
        scratch_shapes=[
            pltpu.VMEM((Hp + 2, Wp + 2, Cin), jnp.float32),   # padded pooled input
            pltpu.VMEM((Hp + 2, Wp + 2, Cmid), jnp.float32),  # padded conv1 output
        ],
        compiler_params=pltpu.CompilerParams(
            dimension_semantics=("parallel",),
            # Explicit limit (safe on v5e/v6e's 128 MiB and v7x's 64 MiB VMEM).
            vmem_limit_bytes=48 * 1024 * 1024),
    )(xw, w1, b1, w2, b2)


@jax.jit
def down_forward(x_nchw, params):
    """down(in_ch, out_ch): MaxPool2d(2) -> (Conv3x3 -> BN -> ReLU) x 2."""
    N, C, H, W = x_nchw.shape
    Hp, Wp = H // 2, W // 2
    # One XLA relayout, done in bf16: NCHW -> (N, 4, Hp, Wp, C).  Channels land
    # on the lane axis and the 2x2 pool window becomes 4 leading taps, so the
    # kernel never needs strided slicing.
    xw = x_nchw.astype(jnp.bfloat16).reshape(N, C, Hp, 2, Wp, 2)
    xw = jnp.transpose(xw, (0, 3, 5, 2, 4, 1)).reshape(N, 4, Hp, Wp, C)
    y = down_fused(xw, params["w1"], params["bias1"], params["w2"], params["bias2"])
    y = y.astype(jnp.float32).reshape(N, Hp, Wp, -1)
    return jnp.transpose(y, (0, 3, 1, 2))                     # NHWC -> NCHW


# --------------------------- deterministic params -------------------------- #

def init_params(key, in_ch, out_ch, eps=1e-5):
    ks = jax.random.split(key, 12)

    def conv_init(kw, kb, cin, cout):
        bound = 1.0 / np.sqrt(cin * 9)
        w = jax.random.uniform(kw, (3, 3, cin, cout), jnp.float32, -bound, bound)
        b = jax.random.uniform(kb, (cout,), jnp.float32, -bound, bound)
        return w, b

    w1, b1 = conv_init(ks[0], ks[1], in_ch, out_ch)
    w2, b2 = conv_init(ks[2], ks[3], out_ch, out_ch)

    def bn_init(kg, kb, km, kv, c):
        g = 1.0 + 0.1 * jax.random.normal(kg, (c,), jnp.float32)
        beta = 0.1 * jax.random.normal(kb, (c,), jnp.float32)
        m = 0.1 * jax.random.normal(km, (c,), jnp.float32)
        v = jnp.abs(1.0 + 0.1 * jax.random.normal(kv, (c,), jnp.float32))
        return g, beta, m, v

    g1, be1, m1, v1 = bn_init(ks[4], ks[5], ks[6], ks[7], out_ch)
    g2, be2, m2, v2 = bn_init(ks[8], ks[9], ks[10], ks[11], out_ch)

    def fold(w, b, g, beta, m, v, cin, cout):
        # Eval-mode BN folded into conv: y = (conv(x)+b - m)/sqrt(v+eps)*g + beta
        s = g / jnp.sqrt(v + eps)                       # (cout,)
        w_f = (w * s).reshape(9 * cin, cout)            # scale folded into weights
        bias = ((b - m) * s + beta).reshape(1, cout)    # conv bias + BN shift
        return w_f.astype(jnp.bfloat16), bias.astype(jnp.float32)

    w1_f, bias1 = fold(w1, b1, g1, be1, m1, v1, in_ch, out_ch)
    w2_f, bias2 = fold(w2, b2, g2, be2, m2, v2, out_ch, out_ch)

    params = {"w1": w1_f, "bias1": bias1, "w2": w2_f, "bias2": bias2}
    raw = dict(w1=w1, b1=b1, g1=g1, be1=be1, m1=m1, v1=v1,
               w2=w2, b2=b2, g2=g2, be2=be2, m2=m2, v2=v2, eps=eps)
    return params, raw


# ------------------------ plain-JAX reference (check) ----------------------- #

def ref_forward(x_nchw, r):
    x = jnp.transpose(x_nchw, (0, 2, 3, 1))
    x = lax.reduce_window(x, -jnp.inf, lax.max, (1, 2, 2, 1), (1, 2, 2, 1), "VALID")

    def block(x, w, b, g, beta, m, v):
        y = lax.conv_general_dilated(
            x, w, (1, 1), "SAME", dimension_numbers=("NHWC", "HWIO", "NHWC")) + b
        y = (y - m) / jnp.sqrt(v + r["eps"]) * g + beta
        return jnp.maximum(y, 0.0)

    x = block(x, r["w1"], r["b1"], r["g1"], r["be1"], r["m1"], r["v1"])
    x = block(x, r["w2"], r["b2"], r["g2"], r["be2"], r["m2"], r["v2"])
    return jnp.transpose(x, (0, 3, 1, 2))


# ----------------------------------- main ----------------------------------- #

if __name__ == "__main__":
    key = jax.random.PRNGKey(0)
    kx, kp = jax.random.split(key)

    in_ch, out_ch = 4, 8
    x = jax.random.normal(kx, (2, in_ch, 16, 16), jnp.float32)   # NCHW, like PyTorch
    params, raw = init_params(kp, in_ch, out_ch)

    out = jax.block_until_ready(down_forward(x, params))
    ref = jax.block_until_ready(ref_forward(x, raw))

    assert out.shape == (2, out_ch, 8, 8), out.shape
    # bf16 input/weights/intermediate/output (f32 accumulate + epilogue) vs. an
    # all-f32 reference -- tolerance covers the end-to-end bf16 rounding.
    np.testing.assert_allclose(np.asarray(out), np.asarray(ref), rtol=3e-2, atol=3e-2)
    print("KERNEL_OK")
</pallas_src>

<mosaic_0001>
module attributes {stable_mosaic.version = 11 : i64} {
  func.func @_down_fused_kernel(%arg0: i32, %arg1: memref<1x4x8x8x4xbf16, #tpu.memory_space<vmem>>, %arg2: memref<36x8xbf16, #tpu.memory_space<vmem>>, %arg3: memref<1x8xf32, #tpu.memory_space<vmem>>, %arg4: memref<72x8xbf16, #tpu.memory_space<vmem>>, %arg5: memref<1x8xf32, #tpu.memory_space<vmem>>, %arg6: memref<1x64x8xbf16, #tpu.memory_space<vmem>>, %arg7: memref<10x10x4xf32, #tpu.memory_space<vmem>>, %arg8: memref<10x10x8xf32, #tpu.memory_space<vmem>>) attributes {dimension_semantics = [#tpu.dimension_semantics<parallel>], iteration_bounds = array<i64: 2>, scalar_prefetch = 0 : i64, scratch_operands = 2 : i64, tpu.core_type = #tpu.core_type<tc>, window_params = [{transform_indices = @transform_0, window_bounds = array<i64: 1, 4, 8, 8, 4>}, {pipeline_mode = #tpu.pipeline_mode<synchronous>, transform_indices = @transform_1, window_bounds = array<i64: 36, 8>}, {pipeline_mode = #tpu.pipeline_mode<synchronous>, transform_indices = @transform_2, window_bounds = array<i64: 1, 8>}, {pipeline_mode = #tpu.pipeline_mode<synchronous>, transform_indices = @transform_3, window_bounds = array<i64: 72, 8>}, {pipeline_mode = #tpu.pipeline_mode<synchronous>, transform_indices = @transform_4, window_bounds = array<i64: 1, 8>}, {transform_indices = @transform_5, window_bounds = array<i64: 1, 64, 8>}]} {
    %c0 = arith.constant 0 : index
    %c0_0 = arith.constant 0 : index
    %c0_1 = arith.constant 0 : index
    %c0_2 = arith.constant 0 : index
    %c0_3 = arith.constant 0 : index
    %0 = vector.load %arg1[%c0, %c0_0, %c0_1, %c0_2, %c0_3] : memref<1x4x8x8x4xbf16, #tpu.memory_space<vmem>>, vector<1x1x8x8x4xbf16>
    %1 = vector.shape_cast %0 : vector<1x1x8x8x4xbf16> to vector<8x8x4xbf16>
    %c0_4 = arith.constant 0 : index
    %c1 = arith.constant 1 : index
    %c0_5 = arith.constant 0 : index
    %c0_6 = arith.constant 0 : index
    %c0_7 = arith.constant 0 : index
    %2 = vector.load %arg1[%c0_4, %c1, %c0_5, %c0_6, %c0_7] : memref<1x4x8x8x4xbf16, #tpu.memory_space<vmem>>, vector<1x1x8x8x4xbf16>
    %3 = vector.shape_cast %2 : vector<1x1x8x8x4xbf16> to vector<8x8x4xbf16>
    %4 = arith.maximumf %1, %3 : vector<8x8x4xbf16>
    %c0_8 = arith.constant 0 : index
    %c2 = arith.constant 2 : index
    %c0_9 = arith.constant 0 : index
    %c0_10 = arith.constant 0 : index
    %c0_11 = arith.constant 0 : index
    %5 = vector.load %arg1[%c0_8, %c2, %c0_9, %c0_10, %c0_11] : memref<1x4x8x8x4xbf16, #tpu.memory_space<vmem>>, vector<1x1x8x8x4xbf16>
    %6 = vector.shape_cast %5 : vector<1x1x8x8x4xbf16> to vector<8x8x4xbf16>
    %c0_12 = arith.constant 0 : index
    %c3 = arith.constant 3 : index
    %c0_13 = arith.constant 0 : index
    %c0_14 = arith.constant 0 : index
    %c0_15 = arith.constant 0 : index
    %7 = vector.load %arg1[%c0_12, %c3, %c0_13, %c0_14, %c0_15] : memref<1x4x8x8x4xbf16, #tpu.memory_space<vmem>>, vector<1x1x8x8x4xbf16>
    %8 = vector.shape_cast %7 : vector<1x1x8x8x4xbf16> to vector<8x8x4xbf16>
    %9 = arith.maximumf %6, %8 : vector<8x8x4xbf16>
    %10 = arith.maximumf %4, %9 : vector<8x8x4xbf16>
    %11 = arith.extf %10 : vector<8x8x4xbf16> to vector<8x8x4xf32>
    %cst = arith.constant 0.000000e+00 : f32
    %12 = vector.broadcast %cst : f32 to vector<1x10x4xf32>
    %cst_16 = arith.constant 0.000000e+00 : f32
    %13 = vector.broadcast %cst_16 : f32 to vector<8x1x4xf32>
    %c0_17 = arith.constant 0 : index
    %c0_18 = arith.constant 0 : index
    %c0_19 = arith.constant 0 : index
    %14 = vector.load %arg7[%c0_17, %c0_18, %c0_19] : memref<10x10x4xf32, #tpu.memory_space<vmem>>, vector<1x10x4xf32>
    tpu.vector_store %arg7[%c0_17, %c0_18, %c0_19], %12 {strides = array<i32>} : memref<10x10x4xf32, #tpu.memory_space<vmem>>, vector<1x10x4xf32>,
    %c9 = arith.constant 9 : index
    %c0_20 = arith.constant 0 : index
    %c0_21 = arith.constant 0 : index
    %15 = vector.load %arg7[%c9, %c0_20, %c0_21] : memref<10x10x4xf32, #tpu.memory_space<vmem>>, vector<1x10x4xf32>
    tpu.vector_store %arg7[%c9, %c0_20, %c0_21], %12 {strides = array<i32>} : memref<10x10x4xf32, #tpu.memory_space<vmem>>, vector<1x10x4xf32>,
    %c1_22 = arith.constant 1 : index
    %c0_23 = arith.constant 0 : index
    %c0_24 = arith.constant 0 : index
    %16 = vector.load %arg7[%c1_22, %c0_23, %c0_24] : memref<10x10x4xf32, #tpu.memory_space<vmem>>, vector<8x1x4xf32>
    tpu.vector_store %arg7[%c1_22, %c0_23, %c0_24], %13 {strides = array<i32>} : memref<10x10x4xf32, #tpu.memory_space<vmem>>, vector<8x1x4xf32>,
    %c1_25 = arith.constant 1 : index
    %c9_26 = arith.constant 9 : index
    %c0_27 = arith.constant 0 : index
    %17 = vector.load %arg7[%c1_25, %c9_26, %c0_27] : memref<10x10x4xf32, #tpu.memory_space<vmem>>, vector<8x1x4xf32>
    tpu.vector_store %arg7[%c1_25, %c9_26, %c0_27], %13 {strides = array<i32>} : memref<10x10x4xf32, #tpu.memory_space<vmem>>, vector<8x1x4xf32>,
    %c1_28 = arith.constant 1 : index
    %c1_29 = arith.constant 1 : index
    %c0_30 = arith.constant 0 : index
    %18 = vector.load %arg7[%c1_28, %c1_29, %c0_30] : memref<10x10x4xf32, #tpu.memory_space<vmem>>, vector<8x8x4xf32>
    tpu.vector_store %arg7[%c1_28, %c1_29, %c0_30], %11 {strides = array<i32>} : memref<10x10x4xf32, #tpu.memory_space<vmem>>, vector<8x8x4xf32>,
    %cst_31 = arith.constant 0.000000e+00 : f32
    %19 = vector.broadcast %cst_31 : f32 to vector<64x8xf32>
    %c0_32 = arith.constant 0 : index
    %c0_33 = arith.constant 0 : index
    %c0_34 = arith.constant 0 : index
    %20 = vector.load %arg7[%c0_32, %c0_33, %c0_34] : memref<10x10x4xf32, #tpu.memory_space<vmem>>, vector<8x8x4xf32>
    %21 = vector.shape_cast %20 : vector<8x8x4xf32> to vector<64x4xf32>
    %22 = arith.truncf %21 : vector<64x4xf32> to vector<64x4xbf16>
    %c0_35 = arith.constant 0 : index
    %c0_36 = arith.constant 0 : index
    %23 = vector.load %arg2[%c0_35, %c0_36] : memref<36x8xbf16, #tpu.memory_space<vmem>>, vector<4x8xbf16>
    %cst_37 = arith.constant dense<0.000000e+00> : vector<64x8xf32>
    %24 = tpu.matmul %22, %23, %cst_37 {dimension_numbers = #tpu.dot_dimension_numbers<[1], [0], [0], [1], [0, 0, 1, 1], [], []>} : vector<64x4xbf16>, vector<4x8xbf16>, vector<64x8xf32> -> vector<64x8xf32>
    %25 = arith.addf %19, %24 : vector<64x8xf32>
    %c0_38 = arith.constant 0 : index
    %c1_39 = arith.constant 1 : index
    %c0_40 = arith.constant 0 : index
    %26 = vector.load %arg7[%c0_38, %c1_39, %c0_40] : memref<10x10x4xf32, #tpu.memory_space<vmem>>, vector<8x8x4xf32>
    %27 = vector.shape_cast %26 : vector<8x8x4xf32> to vector<64x4xf32>
    %28 = arith.truncf %27 : vector<64x4xf32> to vector<64x4xbf16>
    %c4 = arith.constant 4 : index
    %c0_41 = arith.constant 0 : index
    %29 = vector.load %arg2[%c4, %c0_41] : memref<36x8xbf16, #tpu.memory_space<vmem>>, vector<4x8xbf16>
    %cst_42 = arith.constant dense<0.000000e+00> : vector<64x8xf32>
    %30 = tpu.matmul %28, %29, %cst_42 {dimension_numbers = #tpu.dot_dimension_numbers<[1], [0], [0], [1], [0, 0, 1, 1], [], []>} : vector<64x4xbf16>, vector<4x8xbf16>, vector<64x8xf32> -> vector<64x8xf32>
    %31 = arith.addf %25, %30 : vector<64x8xf32>
    %c0_43 = arith.constant 0 : index
    %c2_44 = arith.constant 2 : index
    %c0_45 = arith.constant 0 : index
    %32 = vector.load %arg7[%c0_43, %c2_44, %c0_45] : memref<10x10x4xf32, #tpu.memory_space<vmem>>, vector<8x8x4xf32>
    %33 = vector.shape_cast %32 : vector<8x8x4xf32> to vector<64x4xf32>
    %34 = arith.truncf %33 : vector<64x4xf32> to vector<64x4xbf16>
    %c8 = arith.constant 8 : index
    %c0_46 = arith.constant 0 : index
    %35 = vector.load %arg2[%c8, %c0_46] : memref<36x8xbf16, #tpu.memory_space<vmem>>, vector<4x8xbf16>
    %cst_47 = arith.constant dense<0.000000e+00> : vector<64x8xf32>
    %36 = tpu.matmul %34, %35, %cst_47 {dimension_numbers = #tpu.dot_dimension_numbers<[1], [0], [0], [1], [0, 0, 1, 1], [], []>} : vector<64x4xbf16>, vector<4x8xbf16>, vector<64x8xf32> -> vector<64x8xf32>
    %37 = arith.addf %31, %36 : vector<64x8xf32>
    %c1_48 = arith.constant 1 : index
    %c0_49 = arith.constant 0 : index
    %c0_50 = arith.constant 0 : index
    %38 = vector.load %arg7[%c1_48, %c0_49, %c0_50] : memref<10x10x4xf32, #tpu.memory_space<vmem>>, vector<8x8x4xf32>
    %39 = vector.shape_cast %38 : vector<8x8x4xf32> to vector<64x4xf32>
    %40 = arith.truncf %39 : vector<64x4xf32> to vector<64x4xbf16>
    %c12 = arith.constant 12 : index
    %c0_51 = arith.constant 0 : index
    %41 = vector.load %arg2[%c12, %c0_51] : memref<36x8xbf16, #tpu.memory_space<vmem>>, vector<4x8xbf16>
    %cst_52 = arith.constant dense<0.000000e+00> : vector<64x8xf32>
    %42 = tpu.matmul %40, %41, %cst_52 {dimension_numbers = #tpu.dot_dimension_numbers<[1], [0], [0], [1], [0, 0, 1, 1], [], []>} : vector<64x4xbf16>, vector<4x8xbf16>, vector<64x8xf32> -> vector<64x8xf32>
    %43 = arith.addf %37, %42 : vector<64x8xf32>
    %c1_53 = arith.constant 1 : index
    %c1_54 = arith.constant 1 : index
    %c0_55 = arith.constant 0 : index
    %44 = vector.load %arg7[%c1_53, %c1_54, %c0_55] : memref<10x10x4xf32, #tpu.memory_space<vmem>>, vector<8x8x4xf32>
    %45 = vector.shape_cast %44 : vector<8x8x4xf32> to vector<64x4xf32>
    %46 = arith.truncf %45 : vector<64x4xf32> to vector<64x4xbf16>
    %c16 = arith.constant 16 : index
    %c0_56 = arith.constant 0 : index
    %47 = vector.load %arg2[%c16, %c0_56] : memref<36x8xbf16, #tpu.memory_space<vmem>>, vector<4x8xbf16>
    %cst_57 = arith.constant dense<0.000000e+00> : vector<64x8xf32>
    %48 = tpu.matmul %46, %47, %cst_57 {dimension_numbers = #tpu.dot_dimension_numbers<[1], [0], [0], [1], [0, 0, 1, 1], [], []>} : vector<64x4xbf16>, vector<4x8xbf16>, vector<64x8xf32> -> vector<64x8xf32>
    %49 = arith.addf %43, %48 : vector<64x8xf32>
    %c1_58 = arith.constant 1 : index
    %c2_59 = arith.constant 2 : index
    %c0_60 = arith.constant 0 : index
    %50 = vector.load %arg7[%c1_58, %c2_59, %c0_60] : memref<10x10x4xf32, #tpu.memory_space<vmem>>, vector<8x8x4xf32>
    %51 = vector.shape_cast %50 : vector<8x8x4xf32> to vector<64x4xf32>
    %52 = arith.truncf %51 : vector<64x4xf32> to vector<64x4xbf16>
    %c20 = arith.constant 20 : index
    %c0_61 = arith.constant 0 : index
    %53 = vector.load %arg2[%c20, %c0_61] : memref<36x8xbf16, #tpu.memory_space<vmem>>, vector<4x8xbf16>
    %cst_62 = arith.constant dense<0.000000e+00> : vector<64x8xf32>
    %54 = tpu.matmul %52, %53, %cst_62 {dimension_numbers = #tpu.dot_dimension_numbers<[1], [0], [0], [1], [0, 0, 1, 1], [], []>} : vector<64x4xbf16>, vector<4x8xbf16>, vector<64x8xf32> -> vector<64x8xf32>
    %55 = arith.addf %49, %54 : vector<64x8xf32>
    %c2_63 = arith.constant 2 : index
    %c0_64 = arith.constant 0 : index
    %c0_65 = arith.constant 0 : index
    %56 = vector.load %arg7[%c2_63, %c0_64, %c0_65] : memref<10x10x4xf32, #tpu.memory_space<vmem>>, vector<8x8x4xf32>
    %57 = vector.shape_cast %56 : vector<8x8x4xf32> to vector<64x4xf32>
    %58 = arith.truncf %57 : vector<64x4xf32> to vector<64x4xbf16>
    %c24 = arith.constant 24 : index
    %c0_66 = arith.constant 0 : index
    %59 = vector.load %arg2[%c24, %c0_66] : memref<36x8xbf16, #tpu.memory_space<vmem>>, vector<4x8xbf16>
    %cst_67 = arith.constant dense<0.000000e+00> : vector<64x8xf32>
    %60 = tpu.matmul %58, %59, %cst_67 {dimension_numbers = #tpu.dot_dimension_numbers<[1], [0], [0], [1], [0, 0, 1, 1], [], []>} : vector<64x4xbf16>, vector<4x8xbf16>, vector<64x8xf32> -> vector<64x8xf32>
    %61 = arith.addf %55, %60 : vector<64x8xf32>
    %c2_68 = arith.constant 2 : index
    %c1_69 = arith.constant 1 : index
    %c0_70 = arith.constant 0 : index
    %62 = vector.load %arg7[%c2_68, %c1_69, %c0_70] : memref<10x10x4xf32, #tpu.memory_space<vmem>>, vector<8x8x4xf32>
    %63 = vector.shape_cast %62 : vector<8x8x4xf32> to vector<64x4xf32>
    %64 = arith.truncf %63 : vector<64x4xf32> to vector<64x4xbf16>
    %c28 = arith.constant 28 : index
    %c0_71 = arith.constant 0 : index
    %65 = vector.load %arg2[%c28, %c0_71] : memref<36x8xbf16, #tpu.memory_space<vmem>>, vector<4x8xbf16>
    %cst_72 = arith.constant dense<0.000000e+00> : vector<64x8xf32>
    %66 = tpu.matmul %64, %65, %cst_72 {dimension_numbers = #tpu.dot_dimension_numbers<[1], [0], [0], [1], [0, 0, 1, 1], [], []>} : vector<64x4xbf16>, vector<4x8xbf16>, vector<64x8xf32> -> vector<64x8xf32>
    %67 = arith.addf %61, %66 : vector<64x8xf32>
    %c2_73 = arith.constant 2 : index
    %c2_74 = arith.constant 2 : index
    %c0_75 = arith.constant 0 : index
    %68 = vector.load %arg7[%c2_73, %c2_74, %c0_75] : memref<10x10x4xf32, #tpu.memory_space<vmem>>, vector<8x8x4xf32>
    %69 = vector.shape_cast %68 : vector<8x8x4xf32> to vector<64x4xf32>
    %70 = arith.truncf %69 : vector<64x4xf32> to vector<64x4xbf16>
    %c32 = arith.constant 32 : index
    %c0_76 = arith.constant 0 : index
    %71 = vector.load %arg2[%c32, %c0_76] : memref<36x8xbf16, #tpu.memory_space<vmem>>, vector<4x8xbf16>
    %cst_77 = arith.constant dense<0.000000e+00> : vector<64x8xf32>
    %72 = tpu.matmul %70, %71, %cst_77 {dimension_numbers = #tpu.dot_dimension_numbers<[1], [0], [0], [1], [0, 0, 1, 1], [], []>} : vector<64x4xbf16>, vector<4x8xbf16>, vector<64x8xf32> -> vector<64x8xf32>
    %73 = arith.addf %67, %72 : vector<64x8xf32>
    %c0_78 = arith.constant 0 : index
    %c0_79 = arith.constant 0 : index
    %74 = vector.load %arg3[%c0_78, %c0_79] : memref<1x8xf32, #tpu.memory_space<vmem>>, vector<1x8xf32>
    %75 = vector.broadcast %74 : vector<1x8xf32> to vector<64x8xf32>
    %76 = arith.addf %73, %75 : vector<64x8xf32>
    %cst_80 = arith.constant 0.000000e+00 : f32
    %77 = vector.broadcast %cst_80 : f32 to vector<64x8xf32>
    %78 = arith.maximumf %76, %77 : vector<64x8xf32>
    %79 = vector.shape_cast %78 : vector<64x8xf32> to vector<8x8x8xf32>
    %cst_81 = arith.constant 0.000000e+00 : f32
    %80 = vector.broadcast %cst_81 : f32 to vector<1x10x8xf32>
    %cst_82 = arith.constant 0.000000e+00 : f32
    %81 = vector.broadcast %cst_82 : f32 to vector<8x1x8xf32>
    %c0_83 = arith.constant 0 : index
    %c0_84 = arith.constant 0 : index
    %c0_85 = arith.constant 0 : index
    %82 = vector.load %arg8[%c0_83, %c0_84, %c0_85] : memref<10x10x8xf32, #tpu.memory_space<vmem>>, vector<1x10x8xf32>
    tpu.vector_store %arg8[%c0_83, %c0_84, %c0_85], %80 {strides = array<i32>} : memref<10x10x8xf32, #tpu.memory_space<vmem>>, vector<1x10x8xf32>,
    %c9_86 = arith.constant 9 : index
    %c0_87 = arith.constant 0 : index
    %c0_88 = arith.constant 0 : index
    %83 = vector.load %arg8[%c9_86, %c0_87, %c0_88] : memref<10x10x8xf32, #tpu.memory_space<vmem>>, vector<1x10x8xf32>
    tpu.vector_store %arg8[%c9_86, %c0_87, %c0_88], %80 {strides = array<i32>} : memref<10x10x8xf32, #tpu.memory_space<vmem>>, vector<1x10x8xf32>,
    %c1_89 = arith.constant 1 : index
    %c0_90 = arith.constant 0 : index
    %c0_91 = arith.constant 0 : index
    %84 = vector.load %arg8[%c1_89, %c0_90, %c0_91] : memref<10x10x8xf32, #tpu.memory_space<vmem>>, vector<8x1x8xf32>
    tpu.vector_store %arg8[%c1_89, %c0_90, %c0_91], %81 {strides = array<i32>} : memref<10x10x8xf32, #tpu.memory_space<vmem>>, vector<8x1x8xf32>,
    %c1_92 = arith.constant 1 : index
    %c9_93 = arith.constant 9 : index
    %c0_94 = arith.constant 0 : index
    %85 = vector.load %arg8[%c1_92, %c9_93, %c0_94] : memref<10x10x8xf32, #tpu.memory_space<vmem>>, vector<8x1x8xf32>
    tpu.vector_store %arg8[%c1_92, %c9_93, %c0_94], %81 {strides = array<i32>} : memref<10x10x8xf32, #tpu.memory_space<vmem>>, vector<8x1x8xf32>,
    %c1_95 = arith.constant 1 : index
    %c1_96 = arith.constant 1 : index
    %c0_97 = arith.constant 0 : index
    %86 = vector.load %arg8[%c1_95, %c1_96, %c0_97] : memref<10x10x8xf32, #tpu.memory_space<vmem>>, vector<8x8x8xf32>
    tpu.vector_store %arg8[%c1_95, %c1_96, %c0_97], %79 {strides = array<i32>} : memref<10x10x8xf32, #tpu.memory_space<vmem>>, vector<8x8x8xf32>,
    %cst_98 = arith.constant 0.000000e+00 : f32
    %87 = vector.broadcast %cst_98 : f32 to vector<64x8xf32>
    %c0_99 = arith.constant 0 : index
    %c0_100 = arith.constant 0 : index
    %c0_101 = arith.constant 0 : index
    %88 = vector.load %arg8[%c0_99, %c0_100, %c0_101] : memref<10x10x8xf32, #tpu.memory_space<vmem>>, vector<8x8x8xf32>
    %89 = vector.shape_cast %88 : vector<8x8x8xf32> to vector<64x8xf32>
    %90 = arith.truncf %89 : vector<64x8xf32> to vector<64x8xbf16>
    %c0_102 = arith.constant 0 : index
    %c0_103 = arith.constant 0 : index
    %91 = vector.load %arg4[%c0_102, %c0_103] : memref<72x8xbf16, #tpu.memory_space<vmem>>, vector<8x8xbf16>
    %cst_104 = arith.constant dense<0.000000e+00> : vector<64x8xf32>
    %92 = tpu.matmul %90, %91, %cst_104 {dimension_numbers = #tpu.dot_dimension_numbers<[1], [0], [0], [1], [0, 0, 1, 1], [], []>} : vector<64x8xbf16>, vector<8x8xbf16>, vector<64x8xf32> -> vector<64x8xf32>
    %93 = arith.addf %87, %92 : vector<64x8xf32>
    %c0_105 = arith.constant 0 : index
    %c1_106 = arith.constant 1 : index
    %c0_107 = arith.constant 0 : index
    %94 = vector.load %arg8[%c0_105, %c1_106, %c0_107] : memref<10x10x8xf32, #tpu.memory_space<vmem>>, vector<8x8x8xf32>
    %95 = vector.shape_cast %94 : vector<8x8x8xf32> to vector<64x8xf32>
    %96 = arith.truncf %95 : vector<64x8xf32> to vector<64x8xbf16>
    %c8_108 = arith.constant 8 : index
    %c0_109 = arith.constant 0 : index
    %97 = vector.load %arg4[%c8_108, %c0_109] : memref<72x8xbf16, #tpu.memory_space<vmem>>, vector<8x8xbf16>
    %cst_110 = arith.constant dense<0.000000e+00> : vector<64x8xf32>
    %98 = tpu.matmul %96, %97, %cst_110 {dimension_numbers = #tpu.dot_dimension_numbers<[1], [0], [0], [1], [0, 0, 1, 1], [], []>} : vector<64x8xbf16>, vector<8x8xbf16>, vector<64x8xf32> -> vector<64x8xf32>
    %99 = arith.addf %93, %98 : vector<64x8xf32>
    %c0_111 = arith.constant 0 : index
    %c2_112 = arith.constant 2 : index
    %c0_113 = arith.constant 0 : index
    %100 = vector.load %arg8[%c0_111, %c2_112, %c0_113] : memref<10x10x8xf32, #tpu.memory_space<vmem>>, vector<8x8x8xf32>
    %101 = vector.shape_cast %100 : vector<8x8x8xf32> to vector<64x8xf32>
    %102 = arith.truncf %101 : vector<64x8xf32> to vector<64x8xbf16>
    %c16_114 = arith.constant 16 : index
    %c0_115 = arith.constant 0 : index
    %103 = vector.load %arg4[%c16_114, %c0_115] : memref<72x8xbf16, #tpu.memory_space<vmem>>, vector<8x8xbf16>
    %cst_116 = arith.constant dense<0.000000e+00> : vector<64x8xf32>
    %104 = tpu.matmul %102, %103, %cst_116 {dimension_numbers = #tpu.dot_dimension_numbers<[1], [0], [0], [1], [0, 0, 1, 1], [], []>} : vector<64x8xbf16>, vector<8x8xbf16>, vector<64x8xf32> -> vector<64x8xf32>
    %105 = arith.addf %99, %104 : vector<64x8xf32>
    %c1_117 = arith.constant 1 : index
    %c0_118 = arith.constant 0 : index
    %c0_119 = arith.constant 0 : index
    %106 = vector.load %arg8[%c1_117, %c0_118, %c0_119] : memref<10x10x8xf32, #tpu.memory_space<vmem>>, vector<8x8x8xf32>
    %107 = vector.shape_cast %106 : vector<8x8x8xf32> to vector<64x8xf32>
    %108 = arith.truncf %107 : vector<64x8xf32> to vector<64x8xbf16>
    %c24_120 = arith.constant 24 : index
    %c0_121 = arith.constant 0 : index
    %109 = vector.load %arg4[%c24_120, %c0_121] : memref<72x8xbf16, #tpu.memory_space<vmem>>, vector<8x8xbf16>
    %cst_122 = arith.constant dense<0.000000e+00> : vector<64x8xf32>
    %110 = tpu.matmul %108, %109, %cst_122 {dimension_numbers = #tpu.dot_dimension_numbers<[1], [0], [0], [1], [0, 0, 1, 1], [], []>} : vector<64x8xbf16>, vector<8x8xbf16>, vector<64x8xf32> -> vector<64x8xf32>
    %111 = arith.addf %105, %110 : vector<64x8xf32>
    %c1_123 = arith.constant 1 : index
    %c1_124 = arith.constant 1 : index
    %c0_125 = arith.constant 0 : index
    %112 = vector.load %arg8[%c1_123, %c1_124, %c0_125] : memref<10x10x8xf32, #tpu.memory_space<vmem>>, vector<8x8x8xf32>
    %113 = vector.shape_cast %112 : vector<8x8x8xf32> to vector<64x8xf32>
    %114 = arith.truncf %113 : vector<64x8xf32> to vector<64x8xbf16>
    %c32_126 = arith.constant 32 : index
    %c0_127 = arith.constant 0 : index
    %115 = vector.load %arg4[%c32_126, %c0_127] : memref<72x8xbf16, #tpu.memory_space<vmem>>, vector<8x8xbf16>
    %cst_128 = arith.constant dense<0.000000e+00> : vector<64x8xf32>
    %116 = tpu.matmul %114, %115, %cst_128 {dimension_numbers = #tpu.dot_dimension_numbers<[1], [0], [0], [1], [0, 0, 1, 1], [], []>} : vector<64x8xbf16>, vector<8x8xbf16>, vector<64x8xf32> -> vector<64x8xf32>
    %117 = arith.addf %111, %116 : vector<64x8xf32>
    %c1_129 = arith.constant 1 : index
    %c2_130 = arith.constant 2 : index
    %c0_131 = arith.constant 0 : index
    %118 = vector.load %arg8[%c1_129, %c2_130, %c0_131] : memref<10x10x8xf32, #tpu.memory_space<vmem>>, vector<8x8x8xf32>
    %119 = vector.shape_cast %118 : vector<8x8x8xf32> to vector<64x8xf32>
    %120 = arith.truncf %119 : vector<64x8xf32> to vector<64x8xbf16>
    %c40 = arith.constant 40 : index
    %c0_132 = arith.constant 0 : index
    %121 = vector.load %arg4[%c40, %c0_132] : memref<72x8xbf16, #tpu.memory_space<vmem>>, vector<8x8xbf16>
    %cst_133 = arith.constant dense<0.000000e+00> : vector<64x8xf32>
    %122 = tpu.matmul %120, %121, %cst_133 {dimension_numbers = #tpu.dot_dimension_numbers<[1], [0], [0], [1], [0, 0, 1, 1], [], []>} : vector<64x8xbf16>, vector<8x8xbf16>, vector<64x8xf32> -> vector<64x8xf32>
    %123 = arith.addf %117, %122 : vector<64x8xf32>
    %c2_134 = arith.constant 2 : index
    %c0_135 = arith.constant 0 : index
    %c0_136 = arith.constant 0 : index
    %124 = vector.load %arg8[%c2_134, %c0_135, %c0_136] : memref<10x10x8xf32, #tpu.memory_space<vmem>>, vector<8x8x8xf32>
    %125 = vector.shape_cast %124 : vector<8x8x8xf32> to vector<64x8xf32>
    %126 = arith.truncf %125 : vector<64x8xf32> to vector<64x8xbf16>
    %c48 = arith.constant 48 : index
    %c0_137 = arith.constant 0 : index
    %127 = vector.load %arg4[%c48, %c0_137] : memref<72x8xbf16, #tpu.memory_space<vmem>>, vector<8x8xbf16>
    %cst_138 = arith.constant dense<0.000000e+00> : vector<64x8xf32>
    %128 = tpu.matmul %126, %127, %cst_138 {dimension_numbers = #tpu.dot_dimension_numbers<[1], [0], [0], [1], [0, 0, 1, 1], [], []>} : vector<64x8xbf16>, vector<8x8xbf16>, vector<64x8xf32> -> vector<64x8xf32>
    %129 = arith.addf %123, %128 : vector<64x8xf32>
    %c2_139 = arith.constant 2 : index
    %c1_140 = arith.constant 1 : index
    %c0_141 = arith.constant 0 : index
    %130 = vector.load %arg8[%c2_139, %c1_140, %c0_141] : memref<10x10x8xf32, #tpu.memory_space<vmem>>, vector<8x8x8xf32>
    %131 = vector.shape_cast %130 : vector<8x8x8xf32> to vector<64x8xf32>
    %132 = arith.truncf %131 : vector<64x8xf32> to vector<64x8xbf16>
    %c56 = arith.constant 56 : index
    %c0_142 = arith.constant 0 : index
    %133 = vector.load %arg4[%c56, %c0_142] : memref<72x8xbf16, #tpu.memory_space<vmem>>, vector<8x8xbf16>
    %cst_143 = arith.constant dense<0.000000e+00> : vector<64x8xf32>
    %134 = tpu.matmul %132, %133, %cst_143 {dimension_numbers = #tpu.dot_dimension_numbers<[1], [0], [0], [1], [0, 0, 1, 1], [], []>} : vector<64x8xbf16>, vector<8x8xbf16>, vector<64x8xf32> -> vector<64x8xf32>
    %135 = arith.addf %129, %134 : vector<64x8xf32>
    %c2_144 = arith.constant 2 : index
    %c2_145 = arith.constant 2 : index
    %c0_146 = arith.constant 0 : index
    %136 = vector.load %arg8[%c2_144, %c2_145, %c0_146] : memref<10x10x8xf32, #tpu.memory_space<vmem>>, vector<8x8x8xf32>
    %137 = vector.shape_cast %136 : vector<8x8x8xf32> to vector<64x8xf32>
    %138 = arith.truncf %137 : vector<64x8xf32> to vector<64x8xbf16>
    %c64 = arith.constant 64 : index
    %c0_147 = arith.constant 0 : index
    %139 = vector.load %arg4[%c64, %c0_147] : memref<72x8xbf16, #tpu.memory_space<vmem>>, vector<8x8xbf16>
    %cst_148 = arith.constant dense<0.000000e+00> : vector<64x8xf32>
    %140 = tpu.matmul %138, %139, %cst_148 {dimension_numbers = #tpu.dot_dimension_numbers<[1], [0], [0], [1], [0, 0, 1, 1], [], []>} : vector<64x8xbf16>, vector<8x8xbf16>, vector<64x8xf32> -> vector<64x8xf32>
    %141 = arith.addf %135, %140 : vector<64x8xf32>
    %c0_149 = arith.constant 0 : index
    %c0_150 = arith.constant 0 : index
    %142 = vector.load %arg5[%c0_149, %c0_150] : memref<1x8xf32, #tpu.memory_space<vmem>>, vector<1x8xf32>
    %143 = vector.broadcast %142 : vector<1x8xf32> to vector<64x8xf32>
    %144 = arith.addf %141, %143 : vector<64x8xf32>
    %cst_151 = arith.constant 0.000000e+00 : f32
    %145 = vector.broadcast %cst_151 : f32 to vector<64x8xf32>
    %146 = arith.maximumf %144, %145 : vector<64x8xf32>
    %147 = arith.truncf %146 : vector<64x8xf32> to vector<64x8xbf16>
    %c0_152 = arith.constant 0 : index
    %c0_153 = arith.constant 0 : index
    %c0_154 = arith.constant 0 : index
    %148 = vector.load %arg6[%c0_152, %c0_153, %c0_154] : memref<1x64x8xbf16, #tpu.memory_space<vmem>>, vector<1x64x8xbf16>
    %149 = vector.shape_cast %148 : vector<1x64x8xbf16> to vector<64x8xbf16>
    %150 = vector.shape_cast %147 : vector<64x8xbf16> to vector<1x64x8xbf16>
    tpu.vector_store %arg6[%c0_152, %c0_153, %c0_154], %150 {strides = array<i32>} : memref<1x64x8xbf16, #tpu.memory_space<vmem>>, vector<1x64x8xbf16>,
    return
  }
  func.func @transform_0(%arg0: i32) -> (i32, i32, i32, i32, i32) {
    %c0_i32 = arith.constant 0 : i32
    %c0_i32_0 = arith.constant 0 : i32
    %c0_i32_1 = arith.constant 0 : i32
    %c0_i32_2 = arith.constant 0 : i32
    %c0_i32_3 = arith.constant 0 : i32
    return %arg0, %c0_i32, %c0_i32_0, %c0_i32_1, %c0_i32_2 : i32, i32, i32, i32, i32
  }
  func.func @transform_1(%arg0: i32) -> (i32, i32) {
    %c0_i32 = arith.constant 0 : i32
    %c0_i32_0 = arith.constant 0 : i32
    %c0_i32_1 = arith.constant 0 : i32
    return %c0_i32, %c0_i32_0 : i32, i32
  }
  func.func @transform_2(%arg0: i32) -> (i32, i32) {
    %c0_i32 = arith.constant 0 : i32
    %c0_i32_0 = arith.constant 0 : i32
    %c0_i32_1 = arith.constant 0 : i32
    return %c0_i32, %c0_i32_0 : i32, i32
  }
  func.func @transform_3(%arg0: i32) -> (i32, i32) {
    %c0_i32 = arith.constant 0 : i32
    %c0_i32_0 = arith.constant 0 : i32
    %c0_i32_1 = arith.constant 0 : i32
    return %c0_i32, %c0_i32_0 : i32, i32
  }
  func.func @transform_4(%arg0: i32) -> (i32, i32) {
    %c0_i32 = arith.constant 0 : i32
    %c0_i32_0 = arith.constant 0 : i32
    %c0_i32_1 = arith.constant 0 : i32
    return %c0_i32, %c0_i32_0 : i32, i32
  }
  func.func @transform_5(%arg0: i32) -> (i32, i32, i32) {
    %c0_i32 = arith.constant 0 : i32
    %c0_i32_0 = arith.constant 0 : i32
    %c0_i32_1 = arith.constant 0 : i32
    return %arg0, %c0_i32, %c0_i32_0 : i32, i32, i32
  }
}

</mosaic_0001>

<bundles_post_ra>
// kernel: down_forward.1
= control target key start
LH: loop header
LB: loop body
LE: loop exit
PB: predicated region body
PF: predicated region fallthrough
CT: control target
= control target key end

     0   :  { %s2906_s18 = smov 0   ;;  %s3369_s0 = inlined_call_operand.vmem [shape: bf16[2,4,8,8,4], index: 0, kind: input, shape index: {}]   ;;  %s3370_s1 = inlined_call_operand.vmem [shape: bf16[36,8], index: 1, kind: input, shape index: {}]   ;;  %s3371_s2 = inlined_call_operand.vmem [shape: f32[1,8], index: 2, kind: input, shape index: {}]   ;;  %s3372_s3 = inlined_call_operand.vmem [shape: bf16[72,8], index: 3, kind: input, shape index: {}]   ;;  %s3373_s4 = inlined_call_operand.vmem [shape: f32[1,8], index: 4, kind: input, shape index: {}]   ;;  %s3374_s5 = inlined_call_operand.vmem [shape: bf16[2,64,8], index: 5, kind: output, shape index: {}]  }
   0x1 LB: > { %s2307_s19 = sadd.s32 4294967295, %s2873_s18   ;;  %p2311_p0 = scmp.ge.s32.totalorder %s2873_s18, 1  ;;  %s2873_s18 = sphi %s2906_s18, %s15_s18  }
   0x2   : > { %p187_p1 = scmp.lt.s32.totalorder %s2873_s18, 3 }
   0x4   : > { %p188_p2 = pnand %p2311_p0, %p187_p1 }
   0x5   : > { %v2863_v0 = vld [vmem:[%s3370_s1] ss:$0 sps:$4 sm:$0xcc] (!%p188_p2)   ;;  %vm368_vm0 = vcmask (!%p188_p2), 1041408   ;;  %p215_p3 = scmp.lt.s32.totalorder (!%p188_p2), %s2307_s19, 1  ;;  %vm293_vm1 = vcmask (!%p188_p2), 31744  }
   0x6   : > { %191 = sbr.rel (%p188_p2) target bundleno = 752 (0x2f0), region = 40  ;;  %vm295_vm2 = vcmask (!%p188_p2), 25600   ;;  %v355_v1 = vrot.slane (!%p188_p2), %v2863_v0, 2  ;;  %v2875_v2 = vmov (!%p188_p2), 0.0   ;;  %vm301_vm3 = vcmask (!%p188_p2), 24576  }
   0x7   : > { %294 = vst.msk [vmem:[#allocation2] sm:$0xff] (!%p188_p2), %vm293_vm1, %v2875_v2  ;;  %298 = vst.msk [vmem:[#allocation2 + $0x90] sm:$0xff] (!%p188_p2), %vm293_vm1, %v2875_v2  ;;  %v2928_v3 = vld [vmem:[%s3370_s1] sm:$0x3] (!%p188_p2)  ;;  %vm1260_vm4 = vcmask (!%p188_p2), 64512   ;;  %vm1268_vm5 = vcmask (!%p188_p2), 57344  }
   0x8   : > { %296 = vst.msk [vmem:[#allocation2 + $0x8] sm:$0x3] (!%p188_p2), %vm295_vm2, %v2875_v2  ;;  %299 = vst.msk [vmem:[#allocation2 + $0x98] sm:$0x3] (!%p188_p2), %vm295_vm2, %v2875_v2  ;;  %2836 = vmatprep.subr.msk.bf16.mxu0 (!%p188_p2), %vm368_vm0, %v355_v1  ;;  %v370_v4 = vsel (!%p188_p2), %vm368_vm0, %v355_v1, 0  ;;  %vm1262_vm6 = vcmask (!%p188_p2), 58368  }
   0x9   : > { %302 = vst.msk [vmem:[#allocation2 + $0x10] sm:$0x1] (!%p188_p2), %vm301_vm3, %v2875_v2  ;;  %303 = vst.msk [vmem:[#allocation2 + $0x20] sm:$0x1] (!%p188_p2), %vm301_vm3, %v2875_v2  ;;  %2529 = vmatpush3.bf16.msra.mxu0 (!%p188_p2), %v370_v4  ;;  %vm1331_vm7 = vcmask (!%p188_p2), 1043456   ;;  %vm2243_vm8 = vcmask (!%p188_p2), 60416  }
   0xa   : > { %304 = vst.msk [vmem:[#allocation2 + $0x30] sm:$0x1] (!%p188_p2), %vm301_vm3, %v2875_v2  ;;  %305 = vst.msk [vmem:[#allocation2 + $0x40] sm:$0x1] (!%p188_p2), %vm301_vm3, %v2875_v2  ;;  %2837 = vmatprep.subr.msk.bf16.mxu0 (!%p188_p2), %vm368_vm0, %v2928_v3 }
   0xb   : > { %306 = vst.msk [vmem:[#allocation2 + $0x50] sm:$0x1] (!%p188_p2), %vm301_vm3, %v2875_v2  ;;  %307 = vst.msk [vmem:[#allocation2 + $0x60] sm:$0x1] (!%p188_p2), %vm301_vm3, %v2875_v2 }
   0xc   : > { %308 = vst.msk [vmem:[#allocation2 + $0x70] sm:$0x1] (!%p188_p2), %vm301_vm3, %v2875_v2  ;;  %309 = vst.msk [vmem:[#allocation2 + $0x80] sm:$0x1] (!%p188_p2), %vm301_vm3, %v2875_v2 }
   0xd   : > { %s3376_s19 = smov (!%p215_p3, %s2307_s19), 1  ;;  %310 = vst.msk [vmem:[#allocation2 + $0x19] sm:$0x1] %vm301_vm3, %v2875_v2  ;;  %311 = vst.msk [vmem:[#allocation2 + $0x29] sm:$0x1] %vm301_vm3, %v2875_v2 }
   0xe   : > { %312 = vst.msk [vmem:[#allocation2 + $0x39] sm:$0x1] %vm301_vm3, %v2875_v2  ;;  %313 = vst.msk [vmem:[#allocation2 + $0x49] sm:$0x1] %vm301_vm3, %v2875_v2  ;;  %s2428_s24 = sshll.u32 %s3376_s19, 7  ;;  %s2429_s16 = sshll.u32 %s3376_s19, 5 }
   0xf   : > { %314 = vst.msk [vmem:[#allocation2 + $0x59] sm:$0x1] %vm301_vm3, %v2875_v2  ;;  %315 = vst.msk [vmem:[#allocation2 + $0x69] sm:$0x1] %vm301_vm3, %v2875_v2  ;;  %s2968_s27 = scalar_lea.vmem %s3369_s0, %s2428_s24  ;;  %v339_v1 = vld [vmem:[#allocation2 + $0x1] sm:$0xff]  ;;  %s3348_s21 = scalar_lea.vmem %s3374_s5, %s2429_s16 }
  0x10   : > { %316 = vst.msk [vmem:[#allocation2 + $0x79] sm:$0x1] %vm301_vm3, %v2875_v2  ;;  %317 = vst.msk [vmem:[#allocation2 + $0x89] sm:$0x1] %vm301_vm3, %v2875_v2  ;;  %v226_v5 = vld [vmem:[%s2968_s27] sm:$0xf] }
  0x11   : > { %v2316_v6 = vld [vmem:[%s2968_s27 + $0x20] sm:$0xf]  ;;  %v227_v10 = vld [vmem:[%s2968_s27 + $0x4] sm:$0xf]  ;;  %v228_v11 = vld [vmem:[%s2968_s27 + $0x8] sm:$0xf] }
  0x12   : > { %v2324_v7 = vld [vmem:[%s2968_s27 + $0x40] sm:$0xf]  ;;  %v243_v8 = vmax.bf16 %v2316_v6, %v226_v5  ;;  %v2317_v13 = vld [vmem:[%s2968_s27 + $0x24] sm:$0xf]  ;;  %v2318_v14 = vld [vmem:[%s2968_s27 + $0x28] sm:$0xf] }
  0x13   : > { %v2332_v9 = vld [vmem:[%s2968_s27 + $0x60] sm:$0xf]  ;;  %v244_v15 = vmax.bf16 %v2317_v13, %v227_v10  ;;  %v245_v16 = vmax.bf16 %v2318_v14, %v228_v11  ;;  %v2325_v17 = vld [vmem:[%s2968_s27 + $0x44] sm:$0xf]  ;;  %v2326_v18 = vld [vmem:[%s2968_s27 + $0x48] sm:$0xf] }
  0x14   : > { %v269_v12 = vmax.bf16 %v2332_v9, %v2324_v7  ;;  %v2333_v19 = vld [vmem:[%s2968_s27 + $0x64] sm:$0xf]  ;;  %v2334_v21 = vld [vmem:[%s2968_s27 + $0x68] sm:$0xf]  ;;  %v229_v23 = vld [vmem:[%s2968_s27 + $0xc] sm:$0xf] }
  0x15   : > { %v270_v22 = vmax.bf16 %v2333_v19, %v2325_v17  ;;  %v230_v24 = vld [vmem:[%s2968_s27 + $0x10] sm:$0xf]  ;;  %v271_v25 = vmax.bf16 %v2334_v21, %v2326_v18  ;;  %v2319_v26 = vld [vmem:[%s2968_s27 + $0x2c] sm:$0xf]  ;;  %v231_v39 = vld [vmem:[%s2968_s27 + $0x14] sm:$0xf] }
  0x16   : > { %v277_v20 = vmax.bf16 %v269_v12, %v243_v8  ;;  %v2320_v27 = vld [vmem:[%s2968_s27 + $0x30] sm:$0xf]  ;;  %v2327_v28 = vld [vmem:[%s2968_s27 + $0x4c] sm:$0xf]  ;;  %v246_v31 = vmax.bf16 %v2319_v26, %v229_v23  ;;  %v232_v40 = vld [vmem:[%s2968_s27 + $0x18] sm:$0xf] }
  0x17   : > { %v278_v30 = vmax.bf16 %v270_v22, %v244_v15  ;;  %v247_v32 = vmax.bf16 %v2320_v27, %v230_v24  ;;  %v2328_v33 = vld [vmem:[%s2968_s27 + $0x50] sm:$0xf]  ;;  %v2335_v34 = vld [vmem:[%s2968_s27 + $0x6c] sm:$0xf]  ;;  %v279_v36 = vmax.bf16 %v271_v25, %v245_v16  ;;  %v2321_v41 = vld [vmem:[%s2968_s27 + $0x34] sm:$0xf] }
  0x18   : > { %v285_v29 = vunpack.c.l.bf16 %v277_v20  ;;  %v2336_v35 = vld [vmem:[%s2968_s27 + $0x70] sm:$0xf]  ;;  %v272_v37 = vmax.bf16 %v2335_v34, %v2327_v28  ;;  %v2322_v43 = vld [vmem:[%s2968_s27 + $0x38] sm:$0xf]  ;;  %v248_v44 = vmax.bf16 %v2321_v41, %v231_v39  ;;  %v2329_v45 = vld [vmem:[%s2968_s27 + $0x54] sm:$0xf] }
  0x19   : > { %v273_v38 = vmax.bf16 %v2336_v35, %v2328_v33  ;;  %v286_v42 = vunpack.c.l.bf16 %v278_v30  ;;  %v2330_v46 = vld [vmem:[%s2968_s27 + $0x58] sm:$0xf]  ;;  %v287_v47 = vunpack.c.l.bf16 %v279_v36  ;;  %v249_v50 = vmax.bf16 %v2322_v43, %v232_v40  ;;  %v2337_v51 = vld [vmem:[%s2968_s27 + $0x74] sm:$0xf]  ;;  %v233_v55 = vld [vmem:[%s2968_s27 + $0x1c] sm:$0xf] }
  0x1a   : > { %318 = vst.msk [vmem:[#allocation2 + $0x11] sm:$0xff] %vm293_vm1, %v285_v29  ;;  %v280_v48 = vmax.bf16 %v272_v37, %v246_v31  ;;  %v2338_v52 = vld [vmem:[%s2968_s27 + $0x78] sm:$0xf]  ;;  %v274_v53 = vmax.bf16 %v2337_v51, %v2329_v45  ;;  %v2323_v56 = vld [vmem:[%s2968_s27 + $0x3c] sm:$0xf]  ;;  %v450_v13 = vsel %vm368_vm0, %v2928_v3, 0 }
  0x1b   : > { %v281_v49 = vmax.bf16 %v273_v38, %v247_v32  ;;  %319 = vst.msk [vmem:[#allocation2 + $0x21] sm:$0xff] %vm293_vm1, %v286_v42  ;;  %v275_v54 = vmax.bf16 %v2338_v52, %v2330_v46  ;;  %320 = vst.msk [vmem:[#allocation2 + $0x31] sm:$0xff] %vm293_vm1, %v287_v47  ;;  %v250_v59 = vmax.bf16 %v2323_v56, %v233_v55  ;;  %v2331_v60 = vld [vmem:[%s2968_s27 + $0x5c] sm:$0xf]  ;;  %v529_v16 = vld [vmem:[%s3370_s1 + $0x4] sm:$0x3] }
  0x1c   : > { %v288_v57 = vunpack.c.l.bf16 %v280_v48  ;;  %v2339_v61 = vld [vmem:[%s2968_s27 + $0x7c] sm:$0xf]  ;;  %v282_v62 = vmax.bf16 %v274_v53, %v248_v44  ;;  %v326_v18 = vld [vmem:[#allocation2] sm:$0xff]  ;;  %v543_v30 = vsel %vm368_vm0, %v529_v16, 0  ;;  %v735_v45 = vld [vmem:[%s3370_s1 + $0x8] sm:$0x3] }
  0x1d   : > { %v289_v58 = vunpack.c.l.bf16 %v281_v49  ;;  %v283_v63 = vmax.bf16 %v275_v54, %v249_v50  ;;  %v276_v0 = vmax.bf16 %v2339_v61, %v2331_v60  ;;  %v2864_v27 = vld [vmem:[%s3370_s1 + $0x4] ss:$0 sps:$4 sm:$0xcc]   ;;  %v2865_v50 = vld [vmem:[%s3370_s1 + $0x8] ss:$0 sps:$4 sm:$0xcc]  }
  0x1e   : > { %321 = vst.msk [vmem:[#allocation2 + $0x41] sm:$0xff] %vm293_vm1, %v288_v57  ;;  %v290_v4 = vunpack.c.l.bf16 %v282_v62  ;;  %v634_v31 = vrot.slane %v2864_v27, 2  ;;  %v517_v34 = vld [vmem:[#allocation2 + $0x2] sm:$0xff]  ;;  %v749_v53 = vsel %vm368_vm0, %v735_v45, 0  ;;  %v840_v54 = vrot.slane %v2865_v50, 2 }
  0x1f   : > { %322 = vst.msk [vmem:[#allocation2 + $0x51] sm:$0xff] %vm293_vm1, %v289_v58  ;;  %v291_v5 = vunpack.c.l.bf16 %v283_v63  ;;  %v284_v6 = vmax.bf16 %v276_v0, %v250_v59  ;;  %v942_v61 = vld [vmem:[%s3370_s1 + $0xc] sm:$0x3] }
  0x20   : > { %323 = vst.msk [vmem:[#allocation2 + $0x61] sm:$0xff] %vm293_vm1, %v290_v4  ;;  %v648_v44 = vsel %vm368_vm0, %v634_v31, 0  ;;  %v854_v60 = vsel %vm368_vm0, %v840_v54, 0 }
  0x21   : > { %v3009_v7 = vld [vmem:[#allocation2 + $0x11] sm:$0xff]  ;;  %324 = vst.msk [vmem:[#allocation2 + $0x71] sm:$0xff] %vm293_vm1, %v291_v5  ;;  %v292_v9 = vunpack.c.l.bf16 %v284_v6  ;;  %v956_v6 = vsel %vm368_vm0, %v942_v61, 0 }
  0x22   : > { %v347_v8 = vpack.c.bf16 %v3009_v7, %v339_v1  ;;  %v3014_v10 = vld [vmem:[#allocation2 + $0x21] sm:$0xff]  ;;  %v3017_v11 = vld [vmem:[#allocation2 + $0x31] sm:$0xff]  ;;  %v2866_v1 = vld [vmem:[%s3370_s1 + $0xc] ss:$0 sps:$4 sm:$0xcc]   ;;  %1261 = vst.msk [vmem:[#allocation3] sm:$0xff] %vm1260_vm4, %v2875_v2 }
  0x23   : > { %325 = vst.msk [vmem:[#allocation2 + $0x81] sm:$0xff] %vm293_vm1, %v292_v9  ;;  %v3022_v12 = vpack.c.bf16 %v3017_v11, %v3014_v10  ;;  %v327_v20 = vld [vmem:[#allocation2 + $0x10] sm:$0xff]  ;;  %v328_v23 = vld [vmem:[#allocation2 + $0x20] sm:$0xff]  ;;  %v731_v57 = vpack.c.bf16 %v3014_v10, %v3009_v7  ;;  %v1047_v7 = vrot.slane %v2866_v1, 2 }
  0x24   : > { %2530 = vmatprep.mubr.msk.bf16.mxu0 %vm293_vm1, %v347_v8  ;;  %v334_v22 = vpack.c.bf16 %v327_v20, %v326_v18  ;;  %v329_v24 = vld [vmem:[#allocation2 + $0x30] sm:$0xff]  ;;  %v519_v38 = vld [vmem:[#allocation2 + $0x22] sm:$0xff]  ;;  %v626_v49 = vpack.c.bf16 %v328_v23, %v327_v20  ;;  %1265 = vst.msk [vmem:[#allocation3 + $0x90] sm:$0xff] %vm1260_vm4, %v2875_v2 }
  0x25   : > { %v3026_v14 = vld [vmem:[#allocation2 + $0x41] sm:$0xff]  ;;  %2531 = vmatmul.mubr.msk.bf16.vlgmr.msra.gmra.mrb[0].mxu0 %vm293_vm1, %v3022_v12  ;;  %v3056_v28 = vpack.c.bf16 %v329_v24, %v328_v23  ;;  %v518_v35 = vld [vmem:[#allocation2 + $0x12] sm:$0xff]  ;;  %v1061_v10 = vsel %vm368_vm0, %v1047_v7, 0  ;;  %1269 = vst.msk [vmem:[#allocation3 + $0x10] sm:$0x1] %vm1268_vm5, %v2875_v2 }
  0x26   : > { %v3028_v15 = vld [vmem:[#allocation2 + $0x51] sm:$0xff]  ;;  %2539 = vmatpush3.bf16.msra.mxu0 %v450_v13  ;;  %v330_v25 = vld [vmem:[#allocation2 + $0x40] sm:$0xff]  ;;  %v525_v37 = vpack.c.bf16 %v518_v35, %v517_v34  ;;  %v732_v58 = vpack.c.bf16 %v3026_v14, %v3017_v11  ;;  %v832_v0 = vpack.c.bf16 %v519_v38, %v518_v35  ;;  %1270 = vst.msk [vmem:[#allocation3 + $0x20] sm:$0x1] %vm1268_vm5, %v2875_v2  ;;  %1271 = vst.msk [vmem:[#allocation3 + $0x30] sm:$0x1] %vm1268_vm5, %v2875_v2 }
  0x27   : > { %v3037_v17 = vpack.c.bf16 %v3028_v15, %v3026_v14  ;;  %v3041_v3 = vld [vmem:[#allocation2 + $0x61] sm:$0xff]  ;;  %2838 = vmatprep.subr.msk.bf16.mxu0 %vm368_vm0, %v529_v16  ;;  %v331_v26 = vld [vmem:[#allocation2 + $0x50] sm:$0xff]  ;;  %v627_v51 = vpack.c.bf16 %v330_v25, %v329_v24  ;;  %1272 = vst.msk [vmem:[#allocation3 + $0x40] sm:$0x1] %vm1268_vm5, %v2875_v2  ;;  %1273 = vst.msk [vmem:[#allocation3 + $0x50] sm:$0x1] %vm1268_vm5, %v2875_v2 }
  0x28   : > { %v3043_v19 = vld [vmem:[#allocation2 + $0x71] sm:$0xff]  ;;  %v3058_v29 = vpack.c.bf16 %v331_v26, %v330_v25  ;;  %v332_v32 = vld [vmem:[#allocation2 + $0x60] sm:$0xff]  ;;  %v733_v59 = vpack.c.bf16 %v3041_v3, %v3028_v15  ;;  %1274 = vst.msk [vmem:[#allocation3 + $0x60] sm:$0x1] %vm1268_vm5, %v2875_v2  ;;  %1275 = vst.msk [vmem:[#allocation3 + $0x70] sm:$0x1] %vm1268_vm5, %v2875_v2 }
  0x29   : > { %2534 = vmatprep.mubr.msk.bf16.mxu0 %vm293_vm1, %v3037_v17  ;;  %v3048_v21 = vpack.c.bf16 %v3043_v19, %v3041_v3  ;;  %v333_v33 = vld [vmem:[#allocation2 + $0x70] sm:$0xff]  ;;  %v521_v40 = vld [vmem:[#allocation2 + $0x42] sm:$0xff]  ;;  %v628_v52 = vpack.c.bf16 %v332_v32, %v331_v26  ;;  %1276 = vst.msk [vmem:[#allocation3 + $0x80] sm:$0x1] %vm1268_vm5, %v2875_v2  ;;  %1277 = vst.msk [vmem:[#allocation3 + $0x19] sm:$0x1] %vm1268_vm5, %v2875_v2 }
  0x2a   : > { %v3066_v36 = vpack.c.bf16 %v333_v33, %v332_v32  ;;  %v520_v39 = vld [vmem:[#allocation2 + $0x32] sm:$0xff]  ;;  %v523_v46 = vld [vmem:[#allocation2 + $0x62] sm:$0xff]  ;;  %v1148_v11 = vld [vmem:[%s3370_s1 + $0x10] sm:$0x3]  ;;  %1278 = vst.msk [vmem:[#allocation3 + $0x29] sm:$0x1] %vm1268_vm5, %v2875_v2 }
  0x2b   : > { %v522_v41 = vld [vmem:[#allocation2 + $0x52] sm:$0xff]  ;;  %v3071_v42 = vpack.c.bf16 %v520_v39, %v519_v38  ;;  %v625_v55 = vld [vmem:[#allocation2 + $0x80] sm:$0xff]  ;;  %v833_v4 = vpack.c.bf16 %v521_v40, %v520_v39  ;;  %v1162_v15 = vsel %vm368_vm0, %v1148_v11, 0  ;;  %1279 = vst.msk [vmem:[#allocation3 + $0x39] sm:$0x1] %vm1268_vm5, %v2875_v2 }
  0x2c   : > { %v3073_v43 = vpack.c.bf16 %v522_v41, %v521_v40  ;;  %v524_v47 = vld [vmem:[#allocation2 + $0x72] sm:$0xff]  ;;  %v629_v56 = vpack.c.bf16 %v625_v55, %v333_v33  ;;  %v730_v62 = vld [vmem:[#allocation2 + $0x81] sm:$0xff]  ;;  %v834_v5 = vpack.c.bf16 %v523_v46, %v522_v41  ;;  %1280 = vst.msk [vmem:[#allocation3 + $0x49] sm:$0x1] %vm1268_vm5, %v2875_v2  ;;  %1281 = vst.msk [vmem:[#allocation3 + $0x59] sm:$0x1] %vm1268_vm5, %v2875_v2 }
  0x2d   : > { %2535 = vmatmul.mubr.msk.bf16.gmra.mrb[4].mxu0 %vm293_vm1, %v3048_v21  ;;  %v3084_v48 = vpack.c.bf16 %v524_v47, %v523_v46  ;;  %v734_v63 = vpack.c.bf16 %v730_v62, %v3043_v19  ;;  %v831_v8 = vld [vmem:[#allocation2 + $0x82] sm:$0xff]  ;;  %v937_v13 = vld [vmem:[#allocation2 + $0x90] sm:$0xff]  ;;  %1282 = vst.msk [vmem:[#allocation3 + $0x69] sm:$0x1] %vm1268_vm5, %v2875_v2  ;;  %1283 = vst.msk [vmem:[#allocation3 + $0x79] sm:$0x1] %vm1268_vm5, %v2875_v2 }
  0x2e   : > { %2540 = vmatprep.mubr.msk.bf16.mxu0 %vm293_vm1, %v334_v22  ;;  %v835_v9 = vpack.c.bf16 %v831_v8, %v524_v47  ;;  %v941_v14 = vpack.c.bf16 %v937_v13, %v625_v55  ;;  %v1038_v16 = vld [vmem:[#allocation2 + $0x91] sm:$0xff]  ;;  %1284 = vst.msk [vmem:[#allocation3 + $0x89] sm:$0x1] %vm1268_vm5, %v2875_v2  ;;  %v1305_v20 = vld [vmem:[%s3372_s3] sm:$0xf] }
  0x2f   : > { %v1042_v18 = vpack.c.bf16 %v1038_v16, %v730_v62  ;;  %1263 = vst.msk [vmem:[#allocation3 + $0x8] sm:$0x3] %vm1262_vm6, %v2875_v2  ;;  %1266 = vst.msk [vmem:[#allocation3 + $0x98] sm:$0x3] %vm1262_vm6, %v2875_v2  ;;  %v2380_v2 = vld [vmem:[%s3371_s2] ss:$0 sm:$0xff] }
  0x35   : > { %2541 = vmatmul.mubr.msk.bf16.vlgmr.msra.gmra.mrb[0].mxu0 %vm293_vm1, %v3056_v28 }
  0x36   : > { %2549 = vmatpush3.bf16.msra.mxu0 %v543_v30  ;;  %2544 = vmatprep.mubr.msk.bf16.mxu0 %vm293_vm1, %v3058_v29  ;;  %v1306_v41 = vld [vmem:[#allocation3 + $0x1] sm:$0xff] }
  0x37   : > { %2839 = vmatprep.subr.msk.bf16.mxu0 %vm368_vm0, %v634_v31 }
  0x3d   : > { %2545 = vmatmul.mubr.msk.bf16.gmra.mrb[4].mxu0 %vm293_vm1, %v3066_v36 }
  0x3e   : > { %2550 = vmatprep.mubr.msk.bf16.mxu0 %vm293_vm1, %v525_v37 }
  0x45   : > { %2551 = vmatmul.mubr.msk.bf16.vlgmr.msra.gmra.mrb[0].mxu0 %vm293_vm1, %v3071_v42 }
  0x46   : > { %2559 = vmatpush3.bf16.msra.mxu0 %v648_v44  ;;  %2554 = vmatprep.mubr.msk.bf16.mxu0 %vm293_vm1, %v3073_v43 }
  0x47   : > { %2840 = vmatprep.subr.msk.bf16.mxu0 %vm368_vm0, %v735_v45 }
  0x4d   : > { %2555 = vmatmul.mubr.msk.bf16.gmra.mrb[4].mxu0 %vm293_vm1, %v3084_v48 }
  0x4e   : > { %2560 = vmatprep.mubr.msk.bf16.mxu0 %vm293_vm1, %v626_v49 }
  0x55   : > { %2561 = vmatmul.mubr.msk.bf16.vlgmr.msra.gmra.mrb[0].mxu0 %vm293_vm1, %v627_v51  ;;  %v1413_v51 = vsel %vm1331_vm7, %v1305_v20, 0 }
  0x56   : > { %2569 = vmatpush3.bf16.msra.mxu0 %v749_v53  ;;  %2564 = vmatprep.mubr.msk.bf16.mxu0 %vm293_vm1, %v628_v52  ;;  %v1492_v52 = vld [vmem:[%s3372_s3 + $0x8] sm:$0xf] }
  0x57   : > { %2841 = vmatprep.subr.msk.bf16.mxu0 %vm368_vm0, %v840_v54 }
  0x5d   : > { %2565 = vmatmul.mubr.msk.bf16.gmra.mrb[4].mxu0 %vm293_vm1, %v629_v56  ;;  %v1293_v56 = vld [vmem:[#allocation3] sm:$0xff] }
  0x5e   : > { %2570 = vmatprep.mubr.msk.bf16.mxu0 %vm293_vm1, %v731_v57 }
  0x65   : > { %2571 = vmatmul.mubr.msk.bf16.vlgmr.msra.gmra.mrb[0].mxu0 %vm293_vm1, %v732_v58 }
  0x66   : > { %2579 = vmatpush3.bf16.msra.mxu0 %v854_v60  ;;  %2574 = vmatprep.mubr.msk.bf16.mxu0 %vm293_vm1, %v733_v59 }
  0x67   : > { %2842 = vmatprep.subr.msk.bf16.mxu0 %vm368_vm0, %v942_v61 }
  0x6d   : > { %2575 = vmatmul.mubr.msk.bf16.gmra.mrb[4].mxu0 %vm293_vm1, %v734_v63 }
  0x6e   : > { %2580 = vmatprep.mubr.msk.bf16.mxu0 %vm293_vm1, %v832_v0 }
  0x75   : > { %2581 = vmatmul.mubr.msk.bf16.vlgmr.msra.gmra.mrb[0].mxu0 %vm293_vm1, %v833_v4  ;;  %v1506_v4 = vsel %vm1331_vm7, %v1492_v52, 0 }
  0x76   : > { %2589 = vmatpush3.bf16.msra.mxu0 %v956_v6  ;;  %2584 = vmatprep.mubr.msk.bf16.mxu0 %vm293_vm1, %v834_v5 }
  0x77   : > { %2843 = vmatprep.subr.msk.bf16.mxu0 %vm368_vm0, %v1047_v7  ;;  %v1593_v7 = vld [vmem:[%s3372_s3 + $0xc] sm:$0xf] }
  0x7d   : > { %2585 = vmatmul.mubr.msk.bf16.gmra.mrb[4].mxu0 %vm293_vm1, %v835_v9  ;;  %v1480_v9 = vld [vmem:[#allocation3 + $0x2] sm:$0xff] }
  0x7e   : > { %2590 = vmatprep.mubr.msk.bf16.mxu0 %vm293_vm1, %v3056_v28 }
  0x85   : > { %2591 = vmatmul.mubr.msk.bf16.vlgmr.msra.gmra.mrb[0].mxu0 %vm293_vm1, %v3058_v29 }
  0x86   : > { %2599 = vmatpush3.bf16.msra.mxu0 %v1061_v10  ;;  %2594 = vmatprep.mubr.msk.bf16.mxu0 %vm293_vm1, %v3066_v36 }
  0x87   : > { %2844 = vmatprep.subr.msk.bf16.mxu0 %vm368_vm0, %v1148_v11 }
  0x8d   : > { %2595 = vmatmul.mubr.msk.bf16.gmra.mrb[4].mxu0 %vm293_vm1, %v941_v14 }
  0x8e   : > { %2600 = vmatprep.mubr.msk.bf16.mxu0 %vm293_vm1, %v3022_v12  ;;  %v1143_v12 = vld [vmem:[#allocation2 + $0x92] sm:$0xff] }
  0x8f   : > { %v1147_v3 = vpack.c.bf16 %v1143_v12, %v831_v8 }
  0x95   : > { %2601 = vmatmul.mubr.msk.bf16.vlgmr.msra.gmra.mrb[0].mxu0 %vm293_vm1, %v3037_v17  ;;  %v1318_v17 = vld [vmem:[%s3372_s3 + $0x4] sm:$0xf] }
  0x96   : > { %2609 = vmatpush3.bf16.msra.mxu0 %v1162_v15  ;;  %2604 = vmatprep.mubr.msk.bf16.mxu0 %vm293_vm1, %v3048_v21  ;;  %v1333_v19 = vsel %vm1331_vm7, %v1318_v17, 0 }
  0x97   : > { %2845 = vmatprep.subr.msk.bf16.mxu1 %vm1331_vm7, %v1318_v17 }
  0x98   : > { %2619 = vmatpush3.bf16.msra.mxu1 %v1333_v19 }
  0x99   : > { %2846 = vmatprep.subr.msk.bf16.mxu1 %vm1331_vm7, %v1305_v20  ;;  %v1694_v20 = vld [vmem:[%s3372_s3 + $0x10] sm:$0xf] }
  0x9d   : > { %2605 = vmatmul.mubr.msk.bf16.gmra.mrb[4].mxu0 %vm293_vm1, %v1042_v18 }
  0x9e   : > { %2610 = vmatprep.mubr.msk.bf16.mxu0 %vm293_vm1, %v3071_v42 }
  0xa5   : > { %2611 = vmatmul.mubr.msk.bf16.vlgmr.msra.gmra.mrb[0].mxu0 %vm293_vm1, %v3073_v43 }
  0xa6   : > { %2614 = vmatprep.mubr.msk.bf16.mxu0 %vm293_vm1, %v3084_v48 }
  0xad   : > { %2615 = vmatmul.mubr.msk.bf16.gmra.mrb[4].mxu0 %vm293_vm1, %v1147_v3  ;;  %v1607_v3 = vsel %vm1331_vm7, %v1593_v7, 0 }
 0x178   : > { %v2612_v21 = vpop.f32.mrb[0].mxu0 }
 0x179   : > { %v1246_v22 = vadd.f32 %v2612_v21, %v2380_v2  ;;  %v1198_v23 = vpop.f32.mrb[1].mxu0 }
 0x17a   : > { %v1244_v24 = vadd.f32 %v2380_v2, %v1198_v23  ;;  %v2613_v25 = vpop.f32.mrb[2].mxu0 }
 0x17b   : > { %v1254_v26 = vmax.f32 %v1246_v22, 0.0  ;;  %v1247_v27 = vadd.f32 %v2613_v25, %v2380_v2  ;;  %v1201_v28 = vpop.f32.mrb[3].mxu0  ;;  %v1708_v25 = vsel %vm1331_vm7, %v1694_v20, 0 }
 0x17c   : > { %v1252_v29 = vmax.f32 %v1244_v24, 0.0  ;;  %v1245_v30 = vadd.f32 %v2380_v2, %v1201_v28 }
 0x17d   : > { %1287 = vst.msk [vmem:[#allocation3 + $0x31] sm:$0xff] %vm1260_vm4, %v1254_v26  ;;  %v1255_v31 = vmax.f32 %v1247_v27, 0.0  ;;  %v1795_v27 = vld [vmem:[%s3372_s3 + $0x14] sm:$0xf] }
 0x17e   : > { %1285 = vst.msk [vmem:[#allocation3 + $0x11] sm:$0xff] %vm1260_vm4, %v1252_v29  ;;  %v1253_v32 = vmax.f32 %v1245_v30, 0.0 }
 0x17f   : > { %1288 = vst.msk [vmem:[#allocation3 + $0x41] sm:$0xff] %vm1260_vm4, %v1255_v31 }
 0x180   : > { %1286 = vst.msk [vmem:[#allocation3 + $0x21] sm:$0xff] %vm1260_vm4, %v1253_v32  ;;  %v2616_v33 = vpop.f32.mrb[4].mxu0  ;;  %v1809_v32 = vsel %vm1331_vm7, %v1795_v27, 0 }
 0x181   : > { %v1250_v34 = vadd.f32 %v2616_v33, %v2380_v2  ;;  %v1214_v35 = vpop.f32.mrb[5].mxu0 }
 0x182   : > { %v1248_v36 = vadd.f32 %v2380_v2, %v1214_v35  ;;  %v2617_v37 = vpop.f32.mrb[6].mxu0 }
 0x183   : > { %v1258_v38 = vmax.f32 %v1250_v34, 0.0  ;;  %v1251_v39 = vadd.f32 %v2617_v37, %v2380_v2  ;;  %v1217_v40 = vpop.f32.mrb[7].mxu0  ;;  %v1897_v34 = vld [vmem:[%s3372_s3 + $0x18] sm:$0xf] }
 0x184   : > { %v1256_v42 = vmax.f32 %v1248_v36, 0.0  ;;  %v1249_v43 = vadd.f32 %v2380_v2, %v1217_v40  ;;  %v3213_v49 = vld [vmem:[#allocation3 + $0x31] sm:$0xff] }
 0x185   : > { %1291 = vst.msk [vmem:[#allocation3 + $0x71] sm:$0xff] %vm1260_vm4, %v1258_v38  ;;  %v1259_v44 = vmax.f32 %v1251_v39, 0.0  ;;  %v3206_v45 = vld [vmem:[#allocation3 + $0x11] sm:$0xff]  ;;  %v1911_v39 = vsel %vm1331_vm7, %v1897_v34, 0 }
 0x186   : > { %1289 = vst.msk [vmem:[#allocation3 + $0x51] sm:$0xff] %vm1260_vm4, %v1256_v42  ;;  %v1257_v46 = vmax.f32 %v1249_v43, 0.0  ;;  %v1314_v47 = vpack.c.bf16 %v3206_v45, %v1306_v41  ;;  %v3228_v53 = vld [vmem:[#allocation3 + $0x41] sm:$0xff]  ;;  %v1294_v57 = vld [vmem:[#allocation3 + $0x10] sm:$0xff]  ;;  %v1998_v41 = vld [vmem:[%s3372_s3 + $0x1c] sm:$0xf] }
 0x187   : > { %1292 = vst.msk [vmem:[#allocation3 + $0x81] sm:$0xff] %vm1260_vm4, %v1259_v44  ;;  %v3211_v48 = vld [vmem:[#allocation3 + $0x21] sm:$0xff]  ;;  %v1301_v61 = vpack.c.bf16 %v1294_v57, %v1293_v56  ;;  %v1296_v0 = vld [vmem:[#allocation3 + $0x30] sm:$0xff]  ;;  %v1691_v31 = vpack.c.bf16 %v3228_v53, %v3213_v49  ;;  %v2012_v44 = vsel %vm1331_vm7, %v1998_v41, 0 }
 0x188   : > { %1290 = vst.msk [vmem:[#allocation3 + $0x61] sm:$0xff] %vm1260_vm4, %v1257_v46  ;;  %2620 = vmatprep.mubr.msk.bf16.mxu1 %vm1260_vm4, %v1314_v47  ;;  %v3219_v50 = vpack.c.bf16 %v3213_v49, %v3211_v48  ;;  %v1295_v62 = vld [vmem:[#allocation3 + $0x20] sm:$0xff]  ;;  %v1481_v10 = vld [vmem:[#allocation3 + $0x12] sm:$0xff]  ;;  %v1690_v30 = vpack.c.bf16 %v3211_v48, %v3206_v45 }
 0x189   : > { %v3249_v1 = vpack.c.bf16 %v1296_v0, %v1295_v62  ;;  %v1297_v5 = vld [vmem:[#allocation3 + $0x40] sm:$0xff]  ;;  %v1488_v14 = vpack.c.bf16 %v1481_v10, %v1480_v9  ;;  %v1483_v18 = vld [vmem:[#allocation3 + $0x32] sm:$0xff]  ;;  %v1589_v23 = vpack.c.bf16 %v1295_v62, %v1294_v57 }
 0x18a   : > { %2621 = vmatmul.mubr.msk.bf16.vlgmr.msra.gmra.mrb[0].mxu1 %vm1260_vm4, %v3219_v50  ;;  %v1482_v15 = vld [vmem:[#allocation3 + $0x22] sm:$0xff]  ;;  %v1590_v24 = vpack.c.bf16 %v1297_v5, %v1296_v0  ;;  %v1892_v46 = vld [vmem:[#allocation3 + $0x90] sm:$0xff] }
 0x18b   : > { %2629 = vmatpush3.bf16.msra.mxu1 %v1413_v51  ;;  %v3267_v12 = vpack.c.bf16 %v1483_v18, %v1482_v15  ;;  %v1484_v17 = vld [vmem:[#allocation3 + $0x42] sm:$0xff]  ;;  %v1791_v37 = vpack.c.bf16 %v1482_v15, %v1481_v10  ;;  %v1993_v49 = vld [vmem:[#allocation3 + $0x91] sm:$0xff] }
 0x18c   : > { %2847 = vmatprep.subr.msk.bf16.mxu1 %vm1331_vm7, %v1492_v52  ;;  %v3238_v59 = vld [vmem:[#allocation3 + $0x71] sm:$0xff]  ;;  %v1792_v38 = vpack.c.bf16 %v1484_v17, %v1483_v18  ;;  %v2099_v45 = vld [vmem:[%s3372_s3 + $0x20] sm:$0xf] }
 0x18d   : > { %v3230_v54 = vld [vmem:[#allocation3 + $0x51] sm:$0xff]  ;;  %v2113_v48 = vsel %vm1331_vm7, %v2099_v45, 0 }
 0x18e   : > { %v3234_v55 = vpack.c.bf16 %v3230_v54, %v3228_v53  ;;  %v1298_v63 = vld [vmem:[#allocation3 + $0x50] sm:$0xff]  ;;  %v1588_v28 = vld [vmem:[#allocation3 + $0x80] sm:$0xff] }
 0x18f   : > { %v3236_v58 = vld [vmem:[#allocation3 + $0x61] sm:$0xff]  ;;  %v3252_v6 = vpack.c.bf16 %v1298_v63, %v1297_v5  ;;  %v1300_v11 = vld [vmem:[#allocation3 + $0x70] sm:$0xff]  ;;  %v1896_v47 = vpack.c.bf16 %v1892_v46, %v1588_v28  ;;  %v2417_v53 = vld [vmem:[%s3373_s4] ss:$0 sm:$0xff] }
 0x190   : > { %2624 = vmatprep.mubr.msk.bf16.mxu1 %vm1260_vm4, %v3234_v55  ;;  %v3244_v60 = vpack.c.bf16 %v3238_v59, %v3236_v58  ;;  %v1299_v8 = vld [vmem:[#allocation3 + $0x60] sm:$0xff]  ;;  %v1485_v16 = vld [vmem:[#allocation3 + $0x52] sm:$0xff]  ;;  %v1592_v29 = vpack.c.bf16 %v1588_v28, %v1300_v11  ;;  %v1692_v33 = vpack.c.bf16 %v3236_v58, %v3230_v54 }
 0x191   : > { %v3262_v13 = vpack.c.bf16 %v1300_v11, %v1299_v8  ;;  %v3270_v19 = vpack.c.bf16 %v1485_v16, %v1484_v17  ;;  %v1486_v2 = vld [vmem:[#allocation3 + $0x62] sm:$0xff]  ;;  %v1487_v21 = vld [vmem:[#allocation3 + $0x72] sm:$0xff]  ;;  %v1591_v26 = vpack.c.bf16 %v1299_v8, %v1298_v63 }
 0x192   : > { %2625 = vmatmul.mubr.msk.bf16.gmra.mrb[4].mxu1 %vm1260_vm4, %v3244_v60  ;;  %v1491_v22 = vpack.c.bf16 %v1487_v21, %v1486_v2  ;;  %v1689_v35 = vld [vmem:[#allocation3 + $0x81] sm:$0xff]  ;;  %v1793_v40 = vpack.c.bf16 %v1486_v2, %v1485_v16 }
 0x193   : > { %2630 = vmatprep.mubr.msk.bf16.mxu1 %vm1260_vm4, %v1301_v61  ;;  %v1693_v36 = vpack.c.bf16 %v1689_v35, %v3238_v59  ;;  %v1790_v42 = vld [vmem:[#allocation3 + $0x82] sm:$0xff]  ;;  %v1997_v51 = vpack.c.bf16 %v1993_v49, %v1689_v35 }
 0x194   : > { %v1794_v43 = vpack.c.bf16 %v1790_v42, %v1487_v21 }
 0x19a   : > { %2631 = vmatmul.mubr.msk.bf16.vlgmr.msra.gmra.mrb[0].mxu1 %vm1260_vm4, %v3249_v1 }
 0x19b   : > { %2639 = vmatpush3.bf16.msra.mxu1 %v1506_v4  ;;  %2634 = vmatprep.mubr.msk.bf16.mxu1 %vm1260_vm4, %v3252_v6 }
 0x19c   : > { %2848 = vmatprep.subr.msk.bf16.mxu1 %vm1331_vm7, %v1593_v7 }
 0x1a2   : > { %2635 = vmatmul.mubr.msk.bf16.gmra.mrb[4].mxu1 %vm1260_vm4, %v3262_v13 }
 0x1a3   : > { %2640 = vmatprep.mubr.msk.bf16.mxu1 %vm1260_vm4, %v1488_v14 }
 0x1aa   : > { %2641 = vmatmul.mubr.msk.bf16.vlgmr.msra.gmra.mrb[0].mxu1 %vm1260_vm4, %v3267_v12 }
 0x1ab   : > { %2649 = vmatpush3.bf16.msra.mxu1 %v1607_v3  ;;  %2644 = vmatprep.mubr.msk.bf16.mxu1 %vm1260_vm4, %v3270_v19 }
 0x1ac   : > { %2849 = vmatprep.subr.msk.bf16.mxu1 %vm1331_vm7, %v1694_v20 }
 0x1b2   : > { %2645 = vmatmul.mubr.msk.bf16.gmra.mrb[4].mxu1 %vm1260_vm4, %v1491_v22 }
 0x1b3   : > { %2650 = vmatprep.mubr.msk.bf16.mxu1 %vm1260_vm4, %v1589_v23 }
 0x1ba   : > { %2651 = vmatmul.mubr.msk.bf16.vlgmr.msra.gmra.mrb[0].mxu1 %vm1260_vm4, %v1590_v24 }
 0x1bb   : > { %2659 = vmatpush3.bf16.msra.mxu1 %v1708_v25  ;;  %2654 = vmatprep.mubr.msk.bf16.mxu1 %vm1260_vm4, %v1591_v26 }
 0x1bc   : > { %2850 = vmatprep.subr.msk.bf16.mxu1 %vm1331_vm7, %v1795_v27 }
 0x1c2   : > { %2655 = vmatmul.mubr.msk.bf16.gmra.mrb[4].mxu1 %vm1260_vm4, %v1592_v29 }
 0x1c3   : > { %2660 = vmatprep.mubr.msk.bf16.mxu1 %vm1260_vm4, %v1690_v30 }
 0x1ca   : > { %2661 = vmatmul.mubr.msk.bf16.vlgmr.msra.gmra.mrb[0].mxu1 %vm1260_vm4, %v1691_v31 }
 0x1cb   : > { %2669 = vmatpush3.bf16.msra.mxu1 %v1809_v32  ;;  %2664 = vmatprep.mubr.msk.bf16.mxu1 %vm1260_vm4, %v1692_v33 }
 0x1cc   : > { %2851 = vmatprep.subr.msk.bf16.mxu1 %vm1331_vm7, %v1897_v34 }
 0x1d2   : > { %2665 = vmatmul.mubr.msk.bf16.gmra.mrb[4].mxu1 %vm1260_vm4, %v1693_v36 }
 0x1d3   : > { %2670 = vmatprep.mubr.msk.bf16.mxu1 %vm1260_vm4, %v1791_v37 }
 0x1da   : > { %2671 = vmatmul.mubr.msk.bf16.vlgmr.msra.gmra.mrb[0].mxu1 %vm1260_vm4, %v1792_v38 }
 0x1db   : > { %2679 = vmatpush3.bf16.msra.mxu1 %v1911_v39  ;;  %2674 = vmatprep.mubr.msk.bf16.mxu1 %vm1260_vm4, %v1793_v40 }
 0x1dc   : > { %2852 = vmatprep.subr.msk.bf16.mxu1 %vm1331_vm7, %v1998_v41 }
 0x1e2   : > { %2675 = vmatmul.mubr.msk.bf16.gmra.mrb[4].mxu1 %vm1260_vm4, %v1794_v43 }
 0x1e3   : > { %2680 = vmatprep.mubr.msk.bf16.mxu1 %vm1260_vm4, %v3249_v1 }
 0x1ea   : > { %2681 = vmatmul.mubr.msk.bf16.vlgmr.msra.gmra.mrb[0].mxu1 %vm1260_vm4, %v3252_v6 }
 0x1eb   : > { %2689 = vmatpush3.bf16.msra.mxu1 %v2012_v44  ;;  %2684 = vmatprep.mubr.msk.bf16.mxu1 %vm1260_vm4, %v3262_v13 }
 0x1ec   : > { %2853 = vmatprep.subr.msk.bf16.mxu1 %vm1331_vm7, %v2099_v45 }
 0x1f2   : > { %2685 = vmatmul.mubr.msk.bf16.gmra.mrb[4].mxu1 %vm1260_vm4, %v1896_v47 }
 0x1f3   : > { %2690 = vmatprep.mubr.msk.bf16.mxu1 %vm1260_vm4, %v3219_v50  ;;  %v2094_v50 = vld [vmem:[#allocation3 + $0x92] sm:$0xff] }
 0x1f4   : > { %v2098_v52 = vpack.c.bf16 %v2094_v50, %v1790_v42 }
 0x1fa   : > { %2691 = vmatmul.mubr.msk.bf16.vlgmr.msra.gmra.mrb[0].mxu1 %vm1260_vm4, %v3234_v55 }
 0x1fb   : > { %2699 = vmatpush3.bf16.msra.mxu1 %v2113_v48  ;;  %2694 = vmatprep.mubr.msk.bf16.mxu1 %vm1260_vm4, %v3244_v60 }
 0x202   : > { %2695 = vmatmul.mubr.msk.bf16.gmra.mrb[4].mxu1 %vm1260_vm4, %v1997_v51 }
 0x203   : > { %2700 = vmatprep.mubr.msk.bf16.mxu1 %vm1260_vm4, %v3267_v12 }
 0x20a   : > { %2701 = vmatmul.mubr.msk.bf16.vlgmr.msra.gmra.mrb[0].mxu1 %vm1260_vm4, %v3270_v19 }
 0x20b   : > { %2704 = vmatprep.mubr.msk.bf16.mxu1 %vm1260_vm4, %v1491_v22 }
 0x212   : > { %2705 = vmatmul.mubr.msk.bf16.gmra.mrb[4].mxu1 %vm1260_vm4, %v2098_v52 }
 0x2dd   : > { %v2702_v54 = vpop.f32.mrb[0].mxu1 }
 0x2de   : > { %v2197_v55 = vadd.f32 %v2702_v54, %v2417_v53  ;;  %v2149_v56 = vpop.f32.mrb[1].mxu1 }
 0x2df   : > { %v2195_v57 = vadd.f32 %v2417_v53, %v2149_v56  ;;  %v2703_v58 = vpop.f32.mrb[2].mxu1 }
 0x2e0   : > { %v2205_v59 = vmax.f32 %v2197_v55, 0.0  ;;  %v2198_v60 = vadd.f32 %v2703_v58, %v2417_v53  ;;  %v2152_v61 = vpop.f32.mrb[3].mxu1 }
 0x2e1   : > { %v2203_v62 = vmax.f32 %v2195_v57, 0.0  ;;  %v2196_v63 = vadd.f32 %v2417_v53, %v2152_v61 }
 0x2e2   : > { %v2432_v0 = vpack.c.bf16 %v2205_v59, %v2205_v59  ;;  %v2206_v1 = vmax.f32 %v2198_v60, 0.0 }
 0x2e3   : > { %v2430_v4 = vpack.c.bf16 %v2203_v62, %v2203_v62  ;;  %v2204_v5 = vmax.f32 %v2196_v63, 0.0 }
 0x2e4   : > { %2246 = vst.msk [vmem:[%s3348_s21 + $0x8] sm:$0xf] %vm2243_vm8, %v2432_v0  ;;  %v2433_v6 = vpack.c.bf16 %v2206_v1, %v2206_v1 }
 0x2e5   : > { %2244 = vst.msk [vmem:[%s3348_s21] sm:$0xf] %vm2243_vm8, %v2430_v4  ;;  %v2431_v7 = vpack.c.bf16 %v2204_v5, %v2204_v5  ;;  %v2706_v8 = vpop.f32.mrb[4].mxu1 }
 0x2e6   : > { %2247 = vst.msk [vmem:[%s3348_s21 + $0xc] sm:$0xf] %vm2243_vm8, %v2433_v6  ;;  %v2201_v9 = vadd.f32 %v2706_v8, %v2417_v53  ;;  %v2165_v10 = vpop.f32.mrb[5].mxu1 }
 0x2e7   : > { %2245 = vst.msk [vmem:[%s3348_s21 + $0x4] sm:$0xf] %vm2243_vm8, %v2431_v7  ;;  %v2199_v11 = vadd.f32 %v2417_v53, %v2165_v10  ;;  %v2707_v13 = vpop.f32.mrb[6].mxu1 }
 0x2e8   : > { %v2209_v14 = vmax.f32 %v2201_v9, 0.0  ;;  %v2202_v15 = vadd.f32 %v2707_v13, %v2417_v53  ;;  %v2168_v16 = vpop.f32.mrb[7].mxu1 }
 0x2e9   : > { %v2207_v18 = vmax.f32 %v2199_v11, 0.0  ;;  %v2200_v12 = vadd.f32 %v2417_v53, %v2168_v16 }
 0x2ea   : > { %v2436_v3 = vpack.c.bf16 %v2209_v14, %v2209_v14  ;;  %v2210_v17 = vmax.f32 %v2202_v15, 0.0 }
 0x2eb   : > { %v2434_v19 = vpack.c.bf16 %v2207_v18, %v2207_v18  ;;  %v2208_v20 = vmax.f32 %v2200_v12, 0.0 }
 0x2ec   : > { %2250 = vst.msk [vmem:[%s3348_s21 + $0x18] sm:$0xf] %vm2243_vm8, %v2436_v3  ;;  %v2437_v2 = vpack.c.bf16 %v2210_v17, %v2210_v17 }
 0x2ed   : > { %2248 = vst.msk [vmem:[%s3348_s21 + $0x10] sm:$0xf] %vm2243_vm8, %v2434_v19  ;;  %v2435_v21 = vpack.c.bf16 %v2208_v20, %v2208_v20 }
 0x2ee   : > { %2251 = vst.msk [vmem:[%s3348_s21 + $0x1c] sm:$0xf] %vm2243_vm8, %v2437_v2 }
 0x2ef   : > { %2249 = vst.msk [vmem:[%s3348_s21 + $0x14] sm:$0xf] %vm2243_vm8, %v2435_v21 }
 0x2f0 PF: > { %s15_s18 = sadd.s32 1, %s2873_s18  }
 0x2f1   : > { %p12_p4 = scmp.ge.s32.totalorder %s15_s18, 4  }
 0x2f3   :  { %14 = sbr.rel (!%p12_p4) target bundleno = 1 (0x1), region = 79 }

</bundles_post_ra>
